<compile_context>
chip_gen: v5e
topology: v5e:2x2
jax: 0.10.0
libtpu: 0.0.40
codegen_flags: <defaults>
</compile_context>

<pallas_src>
import functools

import jax
import jax.numpy as jnp
from jax.experimental import pallas as pl
from jax.experimental.pallas import tpu as pltpu


def actor_kernel(x_ref, w1_ref, w2_ref, w3_ref, pb_ref, o_ref):
    """Fused 3-layer MLP + tanh + action_range scale for one batch tile (all f32)."""
    h1 = w1_ref.shape[1]
    h2 = w2_ref.shape[1]
    a = w3_ref.shape[1]

    # Packed small operands: row 0 = b1, row 1 = b2, row 2 = b3, row 3 = action_range
    # (each zero-padded to Hmax lanes; we slice the valid prefix statically).
    b1 = pb_ref[0:1, :h1]                                               # (1, H1)
    b2 = pb_ref[1:2, :h2]                                               # (1, H2)
    b3 = pb_ref[2:3, :a]                                                # (1, A)
    ar = pb_ref[3:4, :a]                                                # (1, A)

    x = x_ref[...]                                                      # (TB, S) f32
    h = jnp.dot(x, w1_ref[...], preferred_element_type=jnp.float32)
    h = jnp.maximum(h + b1, 0.0)                                        # ReLU
    h = jnp.dot(h, w2_ref[...], preferred_element_type=jnp.float32)
    h = jnp.maximum(h + b2, 0.0)                                        # ReLU
    h = jnp.dot(h, w3_ref[...], preferred_element_type=jnp.float32)
    o_ref[...] = (jnp.tanh(h + b3) * ar).astype(o_ref.dtype)            # tanh * action_range


def pack_small_params(b1, b2, b3, action_range, action_dim):
    """Pack biases + action_range into one (4, Hmax) f32 buffer.

    Done once at parameter-setup time (NOT per forward call) so the kernel sees a
    single small operand instead of four.
    Accepts PyTorch-style (H,) or (1, H) biases and scalar or per-dim action_range.
    """
    b1 = jnp.ravel(jnp.asarray(b1, jnp.float32))
    b2 = jnp.ravel(jnp.asarray(b2, jnp.float32))
    b3 = jnp.ravel(jnp.asarray(b3, jnp.float32))
    ar = jnp.broadcast_to(jnp.ravel(jnp.asarray(action_range, jnp.float32)),
                          (action_dim,))
    hmax = max(b1.size, b2.size, b3.size, ar.size)

    def pad(v):
        return jnp.pad(v, (0, hmax - v.size))

    return jnp.stack([pad(b1), pad(b2), pad(b3), pad(ar)])              # (4, Hmax) f32


@functools.partial(jax.jit, static_argnames=("grid_steps",))
def actor_forward(x, w1, w2, w3, packed_bias_ar, *, grid_steps=1):
    """Forward pass.  grid_steps=1 (default) is best on v5e/v6e; grid_steps=2 lets the
    batch axis shard across v7x's two TensorCores (pair with pltpu.CORE_PARALLEL below
    when targeting v7x; plain "parallel" is a no-op for cross-core sharding)."""
    B, S = x.shape
    H1 = w1.shape[1]
    H2 = w2.shape[1]
    A = w3.shape[1]
    PB = packed_bias_ar.shape  # (4, Hmax)

    # Biggest possible batch tile: fall back to a single full-array block unless the
    # split tiles stay multiples of 8 sublanes.
    if grid_steps <= 1 or B % grid_steps != 0 or (B // grid_steps) % 8 != 0:
        grid_steps = 1
    batch_tile = B // grid_steps

    grid = (grid_steps,)
    # With one step the semantics label is irrelevant; with >1 independent batch tiles
    # mark it parallel.  (On v7x, swap "parallel" -> pltpu.CORE_PARALLEL to actually
    # split the two steps across the two TensorCores.)
    dim_sem = ("arbitrary",) if grid_steps == 1 else ("parallel",)

    return pl.pallas_call(
        actor_kernel,
        out_shape=jax.ShapeDtypeStruct((B, A), x.dtype),
        grid_spec=pltpu.PrefetchScalarGridSpec(
            num_scalar_prefetch=0,
            grid=grid,
            in_specs=[
                pl.BlockSpec((batch_tile, S), lambda i: (i, 0)),        # x tile
                pl.BlockSpec((S, H1), lambda i: (0, 0)),                # W1 (grid-invariant)
                pl.BlockSpec((H1, H2), lambda i: (0, 0)),               # W2
                pl.BlockSpec((H2, A), lambda i: (0, 0)),                # W3
                pl.BlockSpec(PB, lambda i: (0, 0)),                     # packed b1/b2/b3/ar
            ],
            out_specs=pl.BlockSpec((batch_tile, A), lambda i: (i, 0)),
        ),
        compiler_params=pltpu.CompilerParams(
            dimension_semantics=dim_sem,
            # Footprint is well under 1 MiB on every generation (incl. v7x's 64 MiB VMEM);
            # 32 MiB stays inside the default scoped limits everywhere.
            vmem_limit_bytes=32 * 1024 * 1024,
        ),
    )(x, w1, w2, w3, packed_bias_ar)


def reference_forward(x, w1, b1, w2, b2, w3, b3, action_range):
    h = jnp.maximum(x @ w1 + b1.reshape(1, -1), 0.0)
    h = jnp.maximum(h @ w2 + b2.reshape(1, -1), 0.0)
    h = h @ w3 + b3.reshape(1, -1)
    return jnp.tanh(h) * action_range.reshape(1, -1)


if __name__ == "__main__":
    # Small shapes implied by the module: state vector -> two hidden layers -> action vector.
    batch = 64
    state_dim = 16
    hidden_layers = (32, 32)
    action_dim = 8

    key = jax.random.PRNGKey(0)
    k = jax.random.split(key, 8)

    x = jax.random.normal(k[0], (batch, state_dim), dtype=jnp.float32)

    # Deterministic synthetic parameters (kaiming-ish scale), stored (in, out).
    def init_linear(kw, kb, fan_in, fan_out):
        w = jax.random.normal(kw, (fan_in, fan_out), jnp.float32) / jnp.sqrt(fan_in)
        b = jax.random.normal(kb, (fan_out,), jnp.float32) * 0.01
        return w, b

    w1, b1 = init_linear(k[1], k[2], state_dim, hidden_layers[0])
    w2, b2 = init_linear(k[3], k[4], hidden_layers[0], hidden_layers[1])
    w3, b3 = init_linear(k[5], k[6], hidden_layers[1], action_dim)

    # Per-action-dimension range (like `to_tensor(action_range)` broadcasting over batch).
    action_range = 1.0 + jax.random.uniform(k[7], (action_dim,), jnp.float32)

    # Packed once at parameter time, not per call.
    packed = pack_small_params(b1, b2, b3, action_range, action_dim)

    out = jax.block_until_ready(actor_forward(x, w1, w2, w3, packed))

    ref = reference_forward(x, w1, b1, w2, b2, w3, b3, action_range)
    assert out.shape == (batch, action_dim)
    # Full-f32 pipeline -> tight tolerance vs. the pure-JAX reference.
    assert jnp.allclose(out, ref, atol=1e-4, rtol=1e-4), "mismatch vs pure-JAX reference"

    print("KERNEL_OK")
</pallas_src>

<mosaic_0001>
module attributes {stable_mosaic.version = 11 : i64} {
  func.func @actor_kernel(%arg0: i32, %arg1: memref<64x16xf32, #tpu.memory_space<vmem>>, %arg2: memref<16x32xf32, #tpu.memory_space<vmem>>, %arg3: memref<32x32xf32, #tpu.memory_space<vmem>>, %arg4: memref<32x8xf32, #tpu.memory_space<vmem>>, %arg5: memref<4x32xf32, #tpu.memory_space<vmem>>, %arg6: memref<64x8xf32, #tpu.memory_space<vmem>>) attributes {dimension_semantics = [#tpu.dimension_semantics<arbitrary>], iteration_bounds = array<i64: 1>, scalar_prefetch = 0 : i64, scratch_operands = 0 : i64, tpu.core_type = #tpu.core_type<tc>, window_params = [{transform_indices = @transform_0, window_bounds = array<i64: 64, 16>}, {pipeline_mode = #tpu.pipeline_mode<synchronous>, transform_indices = @transform_1, window_bounds = array<i64: 16, 32>}, {pipeline_mode = #tpu.pipeline_mode<synchronous>, transform_indices = @transform_2, window_bounds = array<i64: 32, 32>}, {pipeline_mode = #tpu.pipeline_mode<synchronous>, transform_indices = @transform_3, window_bounds = array<i64: 32, 8>}, {pipeline_mode = #tpu.pipeline_mode<synchronous>, transform_indices = @transform_4, window_bounds = array<i64: 4, 32>}, {transform_indices = @transform_5, window_bounds = array<i64: 64, 8>}]} {
    %c0 = arith.constant 0 : index
    %c0_0 = arith.constant 0 : index
    %0 = vector.load %arg5[%c0, %c0_0] : memref<4x32xf32, #tpu.memory_space<vmem>>, vector<1x32xf32>
    %c1 = arith.constant 1 : index
    %c0_1 = arith.constant 0 : index
    %1 = vector.load %arg5[%c1, %c0_1] : memref<4x32xf32, #tpu.memory_space<vmem>>, vector<1x32xf32>
    %c2 = arith.constant 2 : index
    %c0_2 = arith.constant 0 : index
    %2 = vector.load %arg5[%c2, %c0_2] : memref<4x32xf32, #tpu.memory_space<vmem>>, vector<1x8xf32>
    %c3 = arith.constant 3 : index
    %c0_3 = arith.constant 0 : index
    %3 = vector.load %arg5[%c3, %c0_3] : memref<4x32xf32, #tpu.memory_space<vmem>>, vector<1x8xf32>
    %c0_4 = arith.constant 0 : index
    %c0_5 = arith.constant 0 : index
    %4 = vector.load %arg1[%c0_4, %c0_5] : memref<64x16xf32, #tpu.memory_space<vmem>>, vector<64x16xf32>
    %c0_6 = arith.constant 0 : index
    %c0_7 = arith.constant 0 : index
    %5 = vector.load %arg2[%c0_6, %c0_7] : memref<16x32xf32, #tpu.memory_space<vmem>>, vector<16x32xf32>
    %cst = arith.constant dense<0.000000e+00> : vector<64x32xf32>
    %6 = tpu.matmul %4, %5, %cst {dimension_numbers = #tpu.dot_dimension_numbers<[1], [0], [0], [1], [0, 0, 1, 1], [], []>} : vector<64x16xf32>, vector<16x32xf32>, vector<64x32xf32> -> vector<64x32xf32>
    %7 = vector.broadcast %0 : vector<1x32xf32> to vector<64x32xf32>
    %8 = arith.addf %6, %7 : vector<64x32xf32>
    %cst_8 = arith.constant 0.000000e+00 : f32
    %9 = vector.broadcast %cst_8 : f32 to vector<64x32xf32>
    %10 = arith.maximumf %8, %9 : vector<64x32xf32>
    %c0_9 = arith.constant 0 : index
    %c0_10 = arith.constant 0 : index
    %11 = vector.load %arg3[%c0_9, %c0_10] : memref<32x32xf32, #tpu.memory_space<vmem>>, vector<32x32xf32>
    %cst_11 = arith.constant dense<0.000000e+00> : vector<64x32xf32>
    %12 = tpu.matmul %10, %11, %cst_11 {dimension_numbers = #tpu.dot_dimension_numbers<[1], [0], [0], [1], [0, 0, 1, 1], [], []>} : vector<64x32xf32>, vector<32x32xf32>, vector<64x32xf32> -> vector<64x32xf32>
    %13 = vector.broadcast %1 : vector<1x32xf32> to vector<64x32xf32>
    %14 = arith.addf %12, %13 : vector<64x32xf32>
    %cst_12 = arith.constant 0.000000e+00 : f32
    %15 = vector.broadcast %cst_12 : f32 to vector<64x32xf32>
    %16 = arith.maximumf %14, %15 : vector<64x32xf32>
    %c0_13 = arith.constant 0 : index
    %c0_14 = arith.constant 0 : index
    %17 = vector.load %arg4[%c0_13, %c0_14] : memref<32x8xf32, #tpu.memory_space<vmem>>, vector<32x8xf32>
    %cst_15 = arith.constant dense<0.000000e+00> : vector<64x8xf32>
    %18 = tpu.matmul %16, %17, %cst_15 {dimension_numbers = #tpu.dot_dimension_numbers<[1], [0], [0], [1], [0, 0, 1, 1], [], []>} : vector<64x32xf32>, vector<32x8xf32>, vector<64x8xf32> -> vector<64x8xf32>
    %19 = vector.broadcast %2 : vector<1x8xf32> to vector<64x8xf32>
    %20 = arith.addf %18, %19 : vector<64x8xf32>
    %21 = math.tanh %20 : vector<64x8xf32>
    %22 = vector.broadcast %3 : vector<1x8xf32> to vector<64x8xf32>
    %23 = arith.mulf %21, %22 : vector<64x8xf32>
    %c0_16 = arith.constant 0 : index
    %c0_17 = arith.constant 0 : index
    %24 = vector.load %arg6[%c0_16, %c0_17] : memref<64x8xf32, #tpu.memory_space<vmem>>, vector<64x8xf32>
    tpu.vector_store %arg6[%c0_16, %c0_17], %23 {strides = array<i32>} : memref<64x8xf32, #tpu.memory_space<vmem>>, vector<64x8xf32>,
    return
  }
  func.func @transform_0(%arg0: i32) -> (i32, i32) {
    %c0_i32 = arith.constant 0 : i32
    %c0_i32_0 = arith.constant 0 : i32
    return %arg0, %c0_i32 : i32, i32
  }
  func.func @transform_1(%arg0: i32) -> (i32, i32) {
    %c0_i32 = arith.constant 0 : i32
    %c0_i32_0 = arith.constant 0 : i32
    %c0_i32_1 = arith.constant 0 : i32
    return %c0_i32, %c0_i32_0 : i32, i32
  }
  func.func @transform_2(%arg0: i32) -> (i32, i32) {
    %c0_i32 = arith.constant 0 : i32
    %c0_i32_0 = arith.constant 0 : i32
    %c0_i32_1 = arith.constant 0 : i32
    return %c0_i32, %c0_i32_0 : i32, i32
  }
  func.func @transform_3(%arg0: i32) -> (i32, i32) {
    %c0_i32 = arith.constant 0 : i32
    %c0_i32_0 = arith.constant 0 : i32
    %c0_i32_1 = arith.constant 0 : i32
    return %c0_i32, %c0_i32_0 : i32, i32
  }
  func.func @transform_4(%arg0: i32) -> (i32, i32) {
    %c0_i32 = arith.constant 0 : i32
    %c0_i32_0 = arith.constant 0 : i32
    %c0_i32_1 = arith.constant 0 : i32
    return %c0_i32, %c0_i32_0 : i32, i32
  }
  func.func @transform_5(%arg0: i32) -> (i32, i32) {
    %c0_i32 = arith.constant 0 : i32
    %c0_i32_0 = arith.constant 0 : i32
    return %arg0, %c0_i32 : i32, i32
  }
}

</mosaic_0001>

<bundles_post_ra>
// kernel: actor_forward.1
= control target key start
LH: loop header
LB: loop body
LE: loop exit
PB: predicated region body
PF: predicated region fallthrough
CT: control target
= control target key end

     0   :  { %vm35_vm0 = vcmask 130048   ;;  %vm114_vm1 = vcmask 261120   ;;  %vm275_vm2 = vcmask 64512   ;;  %s494_s1 = inlined_call_operand.vmem [shape: f32[16,32], index: 1, kind: input, shape index: {}]   ;;  %s495_s0 = inlined_call_operand.vmem [shape: f32[64,16], index: 0, kind: input, shape index: {}]   ;;  %s496_s4 = inlined_call_operand.vmem [shape: f32[4,32], index: 4, kind: input, shape index: {}]   ;;  %s497_s2 = inlined_call_operand.vmem [shape: f32[32,32], index: 2, kind: input, shape index: {}]   ;;  %s498_s3 = inlined_call_operand.vmem [shape: f32[32,8], index: 3, kind: input, shape index: {}]   ;;  %s499_s5 = inlined_call_operand.vmem [shape: f32[64,8], index: 5, kind: output, shape index: {}]  }
   0x1   :  { %v33_v0 = vld [vmem:[%s494_s1 + $0x8] sm:$0xff]  ;;  %v32_v1 = vld [vmem:[%s494_s1] sm:$0xff]  ;;  %v26_v4 = vld [vmem:[%s495_s0 + $0x10] sm:$0xff] }
   0x2   :  { %74 = vmatpush.msra.mxu0 %v33_v0  ;;  %v24_v2 = vld [vmem:[%s495_s0] sm:$0xff]  ;;  %312 = vmatpush.msra.mxu3 %v33_v0  ;;  %v25_v3 = vld [vmem:[%s495_s0 + $0x8] sm:$0xff]  ;;  %v31_v5 = vld [vmem:[%s495_s0 + $0x38] sm:$0xff] }
   0x3   :  { %v112_v6 = vld [vmem:[%s497_s2 + $0x18] sm:$0xff]  ;;  %v28_v8 = vld [vmem:[%s495_s0 + $0x20] sm:$0xff]  ;;  %v29_v9 = vld [vmem:[%s495_s0 + $0x28] sm:$0xff] }
   0x4   :  { %75 = vmatpush.msra.mxu0 %v32_v1  ;;  %313 = vmatpush.msra.mxu3 %v32_v1  ;;  %v27_v7 = vld [vmem:[%s495_s0 + $0x18] sm:$0xff]  ;;  %v30_v10 = vld [vmem:[%s495_s0 + $0x30] sm:$0xff]  ;;  %v110_v12 = vld [vmem:[%s497_s2 + $0x8] sm:$0xff] }
   0x5   :  { %288 = vmatmul.msk.f32.vlgmr.msra.gmra.mxu0 %vm35_vm0, %v24_v2  ;;  %295 = vmatmul.msk.f32.vlgmr.msra.gmra.mxu3 %vm35_vm0, %v31_v5  ;;  %v111_v11 = vld [vmem:[%s497_s2 + $0x10] sm:$0xff]  ;;  %v109_v13 = vld [vmem:[%s497_s2] sm:$0xff]  ;;  %v191_v27 = vld [vmem:[%s498_s3 + $0x18] sm:$0xff] }
   0x6   :  { %151 = vmatpush.msra.mxu1 %v112_v6  ;;  %314 = vmatpush.msrb.mxu3 %v112_v6  ;;  %v322_v14 = vld [vmem:[%s496_s4] ss:$0 sm:$0xff]  ;;  %v190_v40 = vld [vmem:[%s498_s3 + $0x10] sm:$0xff]  ;;  %v189_v41 = vld [vmem:[%s498_s3 + $0x8] sm:$0xff] }
   0x7   :  { %229 = vmatpush.msra.mxu2 %v191_v27  ;;  %v188_v42 = vld [vmem:[%s498_s3] sm:$0xff] }
   0x8   :  { %152 = vmatpush.msra.mxu1 %v111_v11  ;;  %315 = vmatpush.msrb.mxu3 %v111_v11  ;;  %v323_v43 = vld [vmem:[%s496_s4 + $0x1] ss:$0 sm:$0xff] }
   0x9   :  { %230 = vmatpush.msra.mxu2 %v190_v40 }
   0xa   :  { %153 = vmatpush.msra.mxu1 %v110_v12  ;;  %316 = vmatpush.msrb.mxu3 %v110_v12 }
   0xb   :  { %231 = vmatpush.msra.mxu2 %v189_v41 }
   0xc   :  { %154 = vmatpush.msra.mxu1 %v109_v13  ;;  %317 = vmatpush.msrb.mxu3 %v109_v13 }
   0xd   :  { %289 = vmatmul.msk.f32.gmra.mxu0 %vm35_vm0, %v25_v3  ;;  %232 = vmatpush.msra.mxu2 %v188_v42 }
   0xe   :  { %318 = vmatpush.msra.mxu3 %v191_v27 }
  0x10   :  { %319 = vmatpush.msra.mxu3 %v190_v40 }
  0x12   :  { %320 = vmatpush.msra.mxu3 %v189_v41 }
  0x14   :  { %321 = vmatpush.msra.mxu3 %v188_v42 }
  0x15   :  { %290 = vmatmul.msk.f32.gmra.mxu0 %vm35_vm0, %v26_v4  ;;  %v324_v4 = vld [vmem:[%s496_s4 + $0x2] ss:$0 sm:$0xff] }
  0x1d   :  { %291 = vmatmul.msk.f32.gmra.mxu0 %vm35_vm0, %v27_v7  ;;  %v325_v7 = vld [vmem:[%s496_s4 + $0x3] ss:$0 sm:$0xff] }
  0x25   :  { %292 = vmatmul.msk.f32.gmra.mxu0 %vm35_vm0, %v28_v8 }
  0x2d   :  { %293 = vmatmul.msk.f32.gmra.mxu0 %vm35_vm0, %v29_v9 }
  0x35   :  { %294 = vmatmul.msk.f32.gmra.mxu0 %vm35_vm0, %v30_v10 }
  0x82   :  { %v77_v15 = vpop.f32.mrf.mxu0 }
  0x83   :  { %v78_v16 = vadd.f32 %v322_v14, %v77_v15 }
  0x85   :  { %v101_v17 = vmax.f32 %v78_v16, 0.0 }
  0x87   :  { %296 = vmatmul.msk.f32.vlgmr.msra.gmra.mxu1 %vm114_vm1, %v101_v17 }
  0x88   :  { %v98_v36 = vpop.f32.mrf.mxu3 }
  0x89   :  { %v99_v38 = vadd.f32 %v322_v14, %v98_v36 }
  0x8a   :  { %v80_v18 = vpop.f32.mrf.mxu0 }
  0x8b   :  { %v81_v19 = vadd.f32 %v322_v14, %v80_v18  ;;  %v108_v39 = vmax.f32 %v99_v38, 0.0 }
  0x8d   :  { %v102_v20 = vmax.f32 %v81_v19, 0.0 }
  0x8f   :  { %297 = vmatmul.msk.f32.gmra.mxu1 %vm114_vm1, %v102_v20 }
  0x92   :  { %v83_v21 = vpop.f32.mrf.mxu0 }
  0x93   :  { %v84_v22 = vadd.f32 %v322_v14, %v83_v21 }
  0x95   :  { %v103_v23 = vmax.f32 %v84_v22, 0.0 }
  0x97   :  { %298 = vmatmul.msk.f32.gmra.mxu1 %vm114_vm1, %v103_v23 }
  0x9a   :  { %v86_v24 = vpop.f32.mrf.mxu0 }
  0x9b   :  { %v87_v25 = vadd.f32 %v322_v14, %v86_v24 }
  0x9d   :  { %v104_v26 = vmax.f32 %v87_v25, 0.0 }
  0x9f   :  { %299 = vmatmul.msk.f32.gmra.mxu1 %vm114_vm1, %v104_v26 }
  0xa2   :  { %v89_v28 = vpop.f32.mrf.mxu0 }
  0xa3   :  { %v90_v29 = vadd.f32 %v322_v14, %v89_v28 }
  0xa5   :  { %v105_v30 = vmax.f32 %v90_v29, 0.0 }
  0xa7   :  { %300 = vmatmul.msk.f32.gmra.mxu1 %vm114_vm1, %v105_v30 }
  0xaa   :  { %v92_v31 = vpop.f32.mrf.mxu0 }
  0xab   :  { %v93_v32 = vadd.f32 %v322_v14, %v92_v31 }
  0xad   :  { %v106_v33 = vmax.f32 %v93_v32, 0.0 }
  0xaf   :  { %301 = vmatmul.msk.f32.gmra.mxu1 %vm114_vm1, %v106_v33 }
  0xb2   :  { %v95_v34 = vpop.f32.mrf.mxu0 }
  0xb3   :  { %v96_v35 = vadd.f32 %v322_v14, %v95_v34 }
  0xb5   :  { %v107_v37 = vmax.f32 %v96_v35, 0.0 }
  0xb7   :  { %302 = vmatmul.msk.f32.vlgmr.msrb.gmra.mxu3 %vm114_vm1, %v107_v37 }
  0xbf   :  { %303 = vmatmul.msk.f32.gmra.mxu3 %vm114_vm1, %v108_v39 }
 0x104   :  { %v156_v44 = vpop.f32.mrf.mxu1 }
 0x105   :  { %v157_v45 = vadd.f32 %v323_v43, %v156_v44 }
 0x107   :  { %v180_v46 = vmax.f32 %v157_v45, 0.0 }
 0x109   :  { %304 = vmatmul.msk.f32.vlgmr.msra.gmra.mxu2 %vm114_vm1, %v180_v46 }
 0x10c   :  { %v159_v47 = vpop.f32.mrf.mxu1 }
 0x10d   :  { %v160_v48 = vadd.f32 %v323_v43, %v159_v47 }
 0x10f   :  { %v181_v49 = vmax.f32 %v160_v48, 0.0 }
 0x111   :  { %305 = vmatmul.msk.f32.gmra.mxu2 %vm114_vm1, %v181_v49 }
 0x114   :  { %v162_v50 = vpop.f32.mrf.mxu1 }
 0x115   :  { %v163_v51 = vadd.f32 %v323_v43, %v162_v50 }
 0x117   :  { %v182_v52 = vmax.f32 %v163_v51, 0.0 }
 0x119   :  { %306 = vmatmul.msk.f32.gmra.mxu2 %vm114_vm1, %v182_v52 }
 0x11c   :  { %v165_v53 = vpop.f32.mrf.mxu1 }
 0x11d   :  { %v166_v54 = vadd.f32 %v323_v43, %v165_v53 }
 0x11f   :  { %v183_v55 = vmax.f32 %v166_v54, 0.0 }
 0x121   :  { %307 = vmatmul.msk.f32.gmra.mxu2 %vm114_vm1, %v183_v55 }
 0x124   :  { %v168_v56 = vpop.f32.mrf.mxu1 }
 0x125   :  { %v169_v57 = vadd.f32 %v323_v43, %v168_v56 }
 0x127   :  { %v184_v58 = vmax.f32 %v169_v57, 0.0 }
 0x129   :  { %308 = vmatmul.msk.f32.gmra.mxu2 %vm114_vm1, %v184_v58 }
 0x12c   :  { %v171_v59 = vpop.f32.mrf.mxu1 }
 0x12d   :  { %v172_v60 = vadd.f32 %v323_v43, %v171_v59 }
 0x12f   :  { %v185_v61 = vmax.f32 %v172_v60, 0.0 }
 0x131   :  { %309 = vmatmul.msk.f32.gmra.mxu2 %vm114_vm1, %v185_v61 }
 0x13a   :  { %v174_v62 = vpop.f32.mrf.mxu3 }
 0x13b   :  { %v175_v63 = vadd.f32 %v323_v43, %v174_v62 }
 0x13d   :  { %v186_v0 = vmax.f32 %v175_v63, 0.0 }
 0x13f   :  { %310 = vmatmul.msk.f32.vlgmr.msra.gmra.mxu3 %vm114_vm1, %v186_v0 }
 0x142   :  { %v177_v1 = vpop.f32.mrf.mxu3 }
 0x143   :  { %v178_v2 = vadd.f32 %v323_v43, %v177_v1 }
 0x145   :  { %v187_v3 = vmax.f32 %v178_v2, 0.0 }
 0x147   :  { %311 = vmatmul.msk.f32.gmra.mxu3 %vm114_vm1, %v187_v3 }
 0x18c   :  { %v234_v5 = vpop.f32.mrf.mxu2 }
 0x18d   :  { %v235_v6 = vadd.f32 %v324_v4, %v234_v5 }
 0x18f   :  { %326 = vtanh.f32 %v235_v6 }
 0x194   :  { %v237_v8 = vpop.f32.mrf.mxu2 }
 0x195   :  { %v327_v9 = vpop.eup %326  ;;  %v238_v10 = vadd.f32 %v324_v4, %v237_v8 }
 0x196   :  { %v267_v11 = vmul.f32 %v327_v9, %v325_v7 }
 0x197   :  { %328 = vtanh.f32 %v238_v10 }
 0x198   :  { %276 = vst.msk [vmem:[%s499_s5] sm:$0xff] %vm275_vm2, %v267_v11 }
 0x19c   :  { %v240_v12 = vpop.f32.mrf.mxu2 }
 0x19d   :  { %v329_v13 = vpop.eup %328  ;;  %v241_v14 = vadd.f32 %v324_v4, %v240_v12 }
 0x19e   :  { %v268_v15 = vmul.f32 %v329_v13, %v325_v7 }
 0x19f   :  { %330 = vtanh.f32 %v241_v14 }
 0x1a0   :  { %277 = vst.msk [vmem:[%s499_s5 + $0x8] sm:$0xff] %vm275_vm2, %v268_v15 }
 0x1a4   :  { %v243_v16 = vpop.f32.mrf.mxu2 }
 0x1a5   :  { %v331_v17 = vpop.eup %330  ;;  %v244_v18 = vadd.f32 %v324_v4, %v243_v16 }
 0x1a6   :  { %v269_v19 = vmul.f32 %v331_v17, %v325_v7 }
 0x1a7   :  { %332 = vtanh.f32 %v244_v18 }
 0x1a8   :  { %278 = vst.msk [vmem:[%s499_s5 + $0x10] sm:$0xff] %vm275_vm2, %v269_v19 }
 0x1ac   :  { %v246_v20 = vpop.f32.mrf.mxu2 }
 0x1ad   :  { %v333_v21 = vpop.eup %332  ;;  %v247_v22 = vadd.f32 %v324_v4, %v246_v20 }
 0x1ae   :  { %v270_v23 = vmul.f32 %v333_v21, %v325_v7 }
 0x1af   :  { %334 = vtanh.f32 %v247_v22 }
 0x1b0   :  { %279 = vst.msk [vmem:[%s499_s5 + $0x18] sm:$0xff] %vm275_vm2, %v270_v23 }
 0x1b4   :  { %v249_v24 = vpop.f32.mrf.mxu2 }
 0x1b5   :  { %v335_v25 = vpop.eup %334  ;;  %v250_v26 = vadd.f32 %v324_v4, %v249_v24 }
 0x1b6   :  { %v271_v27 = vmul.f32 %v335_v25, %v325_v7 }
 0x1b7   :  { %336 = vtanh.f32 %v250_v26 }
 0x1b8   :  { %280 = vst.msk [vmem:[%s499_s5 + $0x20] sm:$0xff] %vm275_vm2, %v271_v27 }
 0x1bd   :  { %v337_v28 = vpop.eup %336 }
 0x1be   :  { %v272_v29 = vmul.f32 %v337_v28, %v325_v7 }
 0x1c0   :  { %281 = vst.msk [vmem:[%s499_s5 + $0x28] sm:$0xff] %vm275_vm2, %v272_v29 }
 0x1c2   :  { %v252_v30 = vpop.f32.mrf.mxu3 }
 0x1c3   :  { %v253_v31 = vadd.f32 %v324_v4, %v252_v30 }
 0x1c5   :  { %338 = vtanh.f32 %v253_v31 }
 0x1ca   :  { %v255_v32 = vpop.f32.mrf.mxu3 }
 0x1cb   :  { %v339_v33 = vpop.eup %338  ;;  %v256_v34 = vadd.f32 %v324_v4, %v255_v32 }
 0x1cc   :  { %v273_v35 = vmul.f32 %v339_v33, %v325_v7 }
 0x1cd   :  { %340 = vtanh.f32 %v256_v34 }
 0x1ce   :  { %282 = vst.msk [vmem:[%s499_s5 + $0x30] sm:$0xff] %vm275_vm2, %v273_v35 }
 0x1d3   :  { %v341_v36 = vpop.eup %340 }
 0x1d4   :  { %v274_v37 = vmul.f32 %v341_v36, %v325_v7 }
 0x1d6   :  { %283 = vst.msk [vmem:[%s499_s5 + $0x38] sm:$0xff] %vm275_vm2, %v274_v37 }

</bundles_post_ra>
